<compile_context>
chip_gen: v6e
topology: v6e:2x2x1
jax: 0.10.0
libtpu: 0.0.40
codegen_flags: <defaults>
</compile_context>

<pallas_src>
import functools

import jax
import jax.numpy as jnp
from jax.experimental import pallas as pl
from jax.experimental.pallas import tpu as pltpu


def _round_up(x, m):
    return ((x + m - 1) // m) * m


def gin_kernel(x_ref, m_ref,
               w1_ref, b1_ref, w2_ref, b2_ref,
               w3_ref, b3_ref, w4_ref, b4_ref,
               o_ref, *, bt, n_pad):
    # x_ref : (bt * n_pad, Din)   bf16   graphs flattened into the M dim
    # m_ref : (bt, n_pad, n_pad)  bf16   per-graph dense adjacency
    # o_ref : (bt * n_pad, Hp)    f32
    x = x_ref[...]

    # ---- mlp_pre: Linear -> ReLU -> Linear  (all Bt graphs in one MXU matmul)
    h = jnp.dot(x, w1_ref[...], preferred_element_type=jnp.float32) + b1_ref[...]
    h = jnp.maximum(h, 0.0).astype(jnp.bfloat16)
    h = jnp.dot(h, w2_ref[...], preferred_element_type=jnp.float32) + b2_ref[...]

    # ---- _aggr_sum: feat_aggr = mask @ feat  (batched per-graph matmul)
    hp = h.shape[-1]
    h3 = h.reshape(bt, n_pad, hp).astype(jnp.bfloat16)       # f32 reshape, then cast
    a = jnp.einsum('bij,bjh->bih', m_ref[...], h3,
                   preferred_element_type=jnp.float32)
    a2 = a.reshape(bt * n_pad, hp).astype(jnp.bfloat16)

    # ---- mlp_post: Linear -> ReLU -> Linear
    h = jnp.dot(a2, w3_ref[...], preferred_element_type=jnp.float32) + b3_ref[...]
    h = jnp.maximum(h, 0.0).astype(jnp.bfloat16)
    h = jnp.dot(h, w4_ref[...], preferred_element_type=jnp.float32) + b4_ref[...]

    o_ref[...] = h.astype(o_ref.dtype)


def gin_forward(feat_in, mask, params, *,
                row_target=256, vmem_block_budget=16 << 20):
    """feat_in: [B, N, Din] f32, mask: [B, N, N] f32 -> [B, N, H] f32."""
    B, N, Din = feat_in.shape
    H = params["w1"].shape[1]

    # -- pad hidden dim to lane-dense 128-multiple, node dim to sublane (8).
    Hp = _round_up(max(H, 128), 128)
    Np = _round_up(max(N, 8), 8)

    bf16 = jnp.bfloat16
    w1 = jnp.pad(params["w1"], ((0, 0), (0, Hp - H))).astype(bf16)
    w2 = jnp.pad(params["w2"], ((0, Hp - H), (0, Hp - H))).astype(bf16)
    w3 = jnp.pad(params["w3"], ((0, Hp - H), (0, Hp - H))).astype(bf16)
    w4 = jnp.pad(params["w4"], ((0, Hp - H), (0, Hp - H))).astype(bf16)
    b1 = jnp.pad(params["b1"], ((0, 0), (0, Hp - H))).astype(jnp.float32)
    b2 = jnp.pad(params["b2"], ((0, 0), (0, Hp - H))).astype(jnp.float32)
    b3 = jnp.pad(params["b3"], ((0, 0), (0, Hp - H))).astype(jnp.float32)
    b4 = jnp.pad(params["b4"], ((0, 0), (0, Hp - H))).astype(jnp.float32)

    # -- choose how many graphs to pack per grid step (aim for >=row_target rows),
    #    capped so double-buffered per-step blocks stay well inside scoped VMEM.
    bt = max(1, min(B, pl.cdiv(row_target, Np)))

    def block_bytes(t):
        return 2 * (t * Np * Np * 2 + t * Np * Din * 2 + t * Np * Hp * 4)

    while bt > 1 and block_bytes(bt) > vmem_block_budget:
        bt -= 1
    Bp = _round_up(B, bt)

    # -- pad inputs with zeros (exact for the real region) and cast to bf16.
    feat = jnp.pad(feat_in, ((0, Bp - B), (0, Np - N), (0, 0))).astype(bf16)
    feat = feat.reshape(Bp * Np, Din)                       # flatten batch into M
    adj = jnp.pad(mask, ((0, Bp - B), (0, Np - N), (0, Np - N))).astype(bf16)

    kernel = functools.partial(gin_kernel, bt=bt, n_pad=Np)

    def full(arr):
        nd = arr.ndim
        return pl.BlockSpec(arr.shape, lambda g, _nd=nd: (0,) * _nd)

    out_flat = pl.pallas_call(
        kernel,
        out_shape=jax.ShapeDtypeStruct((Bp * Np, Hp), jnp.float32),
        grid_spec=pltpu.PrefetchScalarGridSpec(
            num_scalar_prefetch=0,
            grid=(Bp // bt,),
            in_specs=[
                pl.BlockSpec((bt * Np, Din), lambda g: (g, 0)),   # flattened feats
                pl.BlockSpec((bt, Np, Np), lambda g: (g, 0, 0)),  # per-graph masks
                # weights/biases: constant block index -> Pallas does not re-DMA
                # them across grid steps.
                full(w1), full(b1), full(w2), full(b2),
                full(w3), full(b3), full(w4), full(b4),
            ],
            out_specs=pl.BlockSpec((bt * Np, Hp), lambda g: (g, 0)),
        ),
        compiler_params=pltpu.CompilerParams(
            dimension_semantics=("parallel",)),
    )(feat, adj, w1, b1, w2, b2, w3, b3, w4, b4)

    out = out_flat.reshape(Bp, Np, Hp)[:B, :N, :H]
    return out


def init_params(key, dim_in, dim_hid):
    """Deterministic synthetic parameters (kaiming-ish uniform scale)."""
    ks = jax.random.split(key, 8)

    def lin(kw, kb, fan_in, fan_out):
        bound = 1.0 / jnp.sqrt(fan_in)
        w = jax.random.uniform(kw, (fan_in, fan_out), jnp.float32, -bound, bound)
        b = jax.random.uniform(kb, (1, fan_out), jnp.float32, -bound, bound)
        return w, b

    w1, b1 = lin(ks[0], ks[1], dim_in, dim_hid)
    w2, b2 = lin(ks[2], ks[3], dim_hid, dim_hid)
    w3, b3 = lin(ks[4], ks[5], dim_hid, dim_hid)
    w4, b4 = lin(ks[6], ks[7], dim_hid, dim_hid)
    return dict(w1=w1, b1=b1, w2=w2, b2=b2, w3=w3, b3=b3, w4=w4, b4=b4)


def gin_reference(feat_in, mask, p):
    h = jnp.maximum(feat_in @ p["w1"] + p["b1"], 0.0)
    h = h @ p["w2"] + p["b2"]
    a = jnp.einsum("bij,bjh->bih", mask, h)
    h = jnp.maximum(a @ p["w3"] + p["b3"], 0.0)
    return h @ p["w4"] + p["b4"]


if __name__ == "__main__":
    B, N, DIM_IN, DIM_HID = 2, 8, 4, 32

    key = jax.random.PRNGKey(0)
    k_feat, k_mask, k_par = jax.random.split(key, 3)

    feat_in = jax.random.normal(k_feat, (B, N, DIM_IN), dtype=jnp.float32)
    # binary adjacency mask (self-loops included), as .float() in PyTorch
    mask = (jax.random.uniform(k_mask, (B, N, N)) > 0.5).astype(jnp.float32)
    mask = jnp.maximum(mask, jnp.eye(N, dtype=jnp.float32)[None])

    params = init_params(k_par, DIM_IN, DIM_HID)

    out = gin_forward(feat_in, mask, params)
    out = jax.block_until_ready(out)

    ref = gin_reference(feat_in, mask, params)
    assert out.shape == (B, N, DIM_HID)
    # bf16 compute with f32 accumulation -> relaxed tolerance vs f32 reference.
    assert jnp.allclose(out, ref, atol=5e-2, rtol=5e-2), "mismatch vs JAX reference"

    print("KERNEL_OK")
</pallas_src>

<mosaic_0001>
module attributes {stable_mosaic.version = 11 : i64} {
  func.func @gin_kernel(%arg0: i32, %arg1: memref<16x4xbf16, #tpu.memory_space<vmem>>, %arg2: memref<2x8x8xbf16, #tpu.memory_space<vmem>>, %arg3: memref<4x128xbf16, #tpu.memory_space<vmem>>, %arg4: memref<1x128xf32, #tpu.memory_space<vmem>>, %arg5: memref<128x128xbf16, #tpu.memory_space<vmem>>, %arg6: memref<1x128xf32, #tpu.memory_space<vmem>>, %arg7: memref<128x128xbf16, #tpu.memory_space<vmem>>, %arg8: memref<1x128xf32, #tpu.memory_space<vmem>>, %arg9: memref<128x128xbf16, #tpu.memory_space<vmem>>, %arg10: memref<1x128xf32, #tpu.memory_space<vmem>>, %arg11: memref<16x128xf32, #tpu.memory_space<vmem>>) attributes {dimension_semantics = [#tpu.dimension_semantics<parallel>], iteration_bounds = array<i64: 1>, scalar_prefetch = 0 : i64, scratch_operands = 0 : i64, tpu.core_type = #tpu.core_type<tc>, window_params = [{transform_indices = @transform_0, window_bounds = array<i64: 16, 4>}, {transform_indices = @transform_1, window_bounds = array<i64: 2, 8, 8>}, {pipeline_mode = #tpu.pipeline_mode<synchronous>, transform_indices = @transform_2, window_bounds = array<i64: 4, 128>}, {pipeline_mode = #tpu.pipeline_mode<synchronous>, transform_indices = @transform_3, window_bounds = array<i64: 1, 128>}, {pipeline_mode = #tpu.pipeline_mode<synchronous>, transform_indices = @transform_4, window_bounds = array<i64: 128, 128>}, {pipeline_mode = #tpu.pipeline_mode<synchronous>, transform_indices = @transform_5, window_bounds = array<i64: 1, 128>}, {pipeline_mode = #tpu.pipeline_mode<synchronous>, transform_indices = @transform_6, window_bounds = array<i64: 128, 128>}, {pipeline_mode = #tpu.pipeline_mode<synchronous>, transform_indices = @transform_7, window_bounds = array<i64: 1, 128>}, {pipeline_mode = #tpu.pipeline_mode<synchronous>, transform_indices = @transform_8, window_bounds = array<i64: 128, 128>}, {pipeline_mode = #tpu.pipeline_mode<synchronous>, transform_indices = @transform_9, window_bounds = array<i64: 1, 128>}, {transform_indices = @transform_10, window_bounds = array<i64: 16, 128>}]} {
    %c0 = arith.constant 0 : index
    %c0_0 = arith.constant 0 : index
    %0 = vector.load %arg1[%c0, %c0_0] : memref<16x4xbf16, #tpu.memory_space<vmem>>, vector<16x4xbf16>
    %c0_1 = arith.constant 0 : index
    %c0_2 = arith.constant 0 : index
    %1 = vector.load %arg3[%c0_1, %c0_2] : memref<4x128xbf16, #tpu.memory_space<vmem>>, vector<4x128xbf16>
    %cst = arith.constant dense<0.000000e+00> : vector<16x128xf32>
    %2 = tpu.matmul %0, %1, %cst {dimension_numbers = #tpu.dot_dimension_numbers<[1], [0], [0], [1], [0, 0, 1, 1], [], []>} : vector<16x4xbf16>, vector<4x128xbf16>, vector<16x128xf32> -> vector<16x128xf32>
    %c0_3 = arith.constant 0 : index
    %c0_4 = arith.constant 0 : index
    %3 = vector.load %arg4[%c0_3, %c0_4] : memref<1x128xf32, #tpu.memory_space<vmem>>, vector<1x128xf32>
    %4 = vector.broadcast %3 : vector<1x128xf32> to vector<16x128xf32>
    %5 = arith.addf %2, %4 : vector<16x128xf32>
    %cst_5 = arith.constant 0.000000e+00 : f32
    %6 = vector.broadcast %cst_5 : f32 to vector<16x128xf32>
    %7 = arith.maximumf %5, %6 : vector<16x128xf32>
    %8 = arith.truncf %7 : vector<16x128xf32> to vector<16x128xbf16>
    %c0_6 = arith.constant 0 : index
    %c0_7 = arith.constant 0 : index
    %9 = vector.load %arg5[%c0_6, %c0_7] : memref<128x128xbf16, #tpu.memory_space<vmem>>, vector<128x128xbf16>
    %cst_8 = arith.constant dense<0.000000e+00> : vector<16x128xf32>
    %10 = tpu.matmul %8, %9, %cst_8 {dimension_numbers = #tpu.dot_dimension_numbers<[1], [0], [0], [1], [0, 0, 1, 1], [], []>} : vector<16x128xbf16>, vector<128x128xbf16>, vector<16x128xf32> -> vector<16x128xf32>
    %c0_9 = arith.constant 0 : index
    %c0_10 = arith.constant 0 : index
    %11 = vector.load %arg6[%c0_9, %c0_10] : memref<1x128xf32, #tpu.memory_space<vmem>>, vector<1x128xf32>
    %12 = vector.broadcast %11 : vector<1x128xf32> to vector<16x128xf32>
    %13 = arith.addf %10, %12 : vector<16x128xf32>
    %14 = vector.shape_cast %13 : vector<16x128xf32> to vector<2x8x128xf32>
    %15 = arith.truncf %14 : vector<2x8x128xf32> to vector<2x8x128xbf16>
    %c0_11 = arith.constant 0 : index
    %c0_12 = arith.constant 0 : index
    %c0_13 = arith.constant 0 : index
    %16 = vector.load %arg2[%c0_11, %c0_12, %c0_13] : memref<2x8x8xbf16, #tpu.memory_space<vmem>>, vector<2x8x8xbf16>
    "tpu.trace_start"() <{level = 10 : i32, message = "bij,bjh->bih"}> : () -> ()
    %cst_14 = arith.constant dense<0.000000e+00> : vector<2x8x128xf32>
    %17 = tpu.matmul %16, %15, %cst_14 {dimension_numbers = #tpu.dot_dimension_numbers<[2], [1], [1], [2], [0, 0, 0, 1, 1, 2], [0], [0]>} : vector<2x8x8xbf16>, vector<2x8x128xbf16>, vector<2x8x128xf32> -> vector<2x8x128xf32>
    "tpu.trace_stop"() : () -> ()
    %18 = vector.shape_cast %17 : vector<2x8x128xf32> to vector<16x128xf32>
    %19 = arith.truncf %18 : vector<16x128xf32> to vector<16x128xbf16>
    %c0_15 = arith.constant 0 : index
    %c0_16 = arith.constant 0 : index
    %20 = vector.load %arg7[%c0_15, %c0_16] : memref<128x128xbf16, #tpu.memory_space<vmem>>, vector<128x128xbf16>
    %cst_17 = arith.constant dense<0.000000e+00> : vector<16x128xf32>
    %21 = tpu.matmul %19, %20, %cst_17 {dimension_numbers = #tpu.dot_dimension_numbers<[1], [0], [0], [1], [0, 0, 1, 1], [], []>} : vector<16x128xbf16>, vector<128x128xbf16>, vector<16x128xf32> -> vector<16x128xf32>
    %c0_18 = arith.constant 0 : index
    %c0_19 = arith.constant 0 : index
    %22 = vector.load %arg8[%c0_18, %c0_19] : memref<1x128xf32, #tpu.memory_space<vmem>>, vector<1x128xf32>
    %23 = vector.broadcast %22 : vector<1x128xf32> to vector<16x128xf32>
    %24 = arith.addf %21, %23 : vector<16x128xf32>
    %cst_20 = arith.constant 0.000000e+00 : f32
    %25 = vector.broadcast %cst_20 : f32 to vector<16x128xf32>
    %26 = arith.maximumf %24, %25 : vector<16x128xf32>
    %27 = arith.truncf %26 : vector<16x128xf32> to vector<16x128xbf16>
    %c0_21 = arith.constant 0 : index
    %c0_22 = arith.constant 0 : index
    %28 = vector.load %arg9[%c0_21, %c0_22] : memref<128x128xbf16, #tpu.memory_space<vmem>>, vector<128x128xbf16>
    %cst_23 = arith.constant dense<0.000000e+00> : vector<16x128xf32>
    %29 = tpu.matmul %27, %28, %cst_23 {dimension_numbers = #tpu.dot_dimension_numbers<[1], [0], [0], [1], [0, 0, 1, 1], [], []>} : vector<16x128xbf16>, vector<128x128xbf16>, vector<16x128xf32> -> vector<16x128xf32>
    %c0_24 = arith.constant 0 : index
    %c0_25 = arith.constant 0 : index
    %30 = vector.load %arg10[%c0_24, %c0_25] : memref<1x128xf32, #tpu.memory_space<vmem>>, vector<1x128xf32>
    %31 = vector.broadcast %30 : vector<1x128xf32> to vector<16x128xf32>
    %32 = arith.addf %29, %31 : vector<16x128xf32>
    %c0_26 = arith.constant 0 : index
    %c0_27 = arith.constant 0 : index
    %33 = vector.load %arg11[%c0_26, %c0_27] : memref<16x128xf32, #tpu.memory_space<vmem>>, vector<16x128xf32>
    tpu.vector_store %arg11[%c0_26, %c0_27], %32 {strides = array<i32>} : memref<16x128xf32, #tpu.memory_space<vmem>>, vector<16x128xf32>,
    return
  }
  func.func @transform_0(%arg0: i32) -> (i32, i32) {
    %c0_i32 = arith.constant 0 : i32
    %c0_i32_0 = arith.constant 0 : i32
    return %arg0, %c0_i32 : i32, i32
  }
  func.func @transform_1(%arg0: i32) -> (i32, i32, i32) {
    %c0_i32 = arith.constant 0 : i32
    %c0_i32_0 = arith.constant 0 : i32
    %c0_i32_1 = arith.constant 0 : i32
    return %arg0, %c0_i32, %c0_i32_0 : i32, i32, i32
  }
  func.func @transform_2(%arg0: i32) -> (i32, i32) {
    %c0_i32 = arith.constant 0 : i32
    %c0_i32_0 = arith.constant 0 : i32
    %c0_i32_1 = arith.constant 0 : i32
    return %c0_i32, %c0_i32_0 : i32, i32
  }
  func.func @transform_3(%arg0: i32) -> (i32, i32) {
    %c0_i32 = arith.constant 0 : i32
    %c0_i32_0 = arith.constant 0 : i32
    %c0_i32_1 = arith.constant 0 : i32
    return %c0_i32, %c0_i32_0 : i32, i32
  }
  func.func @transform_4(%arg0: i32) -> (i32, i32) {
    %c0_i32 = arith.constant 0 : i32
    %c0_i32_0 = arith.constant 0 : i32
    %c0_i32_1 = arith.constant 0 : i32
    return %c0_i32, %c0_i32_0 : i32, i32
  }
  func.func @transform_5(%arg0: i32) -> (i32, i32) {
    %c0_i32 = arith.constant 0 : i32
    %c0_i32_0 = arith.constant 0 : i32
    %c0_i32_1 = arith.constant 0 : i32
    return %c0_i32, %c0_i32_0 : i32, i32
  }
  func.func @transform_6(%arg0: i32) -> (i32, i32) {
    %c0_i32 = arith.constant 0 : i32
    %c0_i32_0 = arith.constant 0 : i32
    %c0_i32_1 = arith.constant 0 : i32
    return %c0_i32, %c0_i32_0 : i32, i32
  }
  func.func @transform_7(%arg0: i32) -> (i32, i32) {
    %c0_i32 = arith.constant 0 : i32
    %c0_i32_0 = arith.constant 0 : i32
    %c0_i32_1 = arith.constant 0 : i32
    return %c0_i32, %c0_i32_0 : i32, i32
  }
  func.func @transform_8(%arg0: i32) -> (i32, i32) {
    %c0_i32 = arith.constant 0 : i32
    %c0_i32_0 = arith.constant 0 : i32
    %c0_i32_1 = arith.constant 0 : i32
    return %c0_i32, %c0_i32_0 : i32, i32
  }
  func.func @transform_9(%arg0: i32) -> (i32, i32) {
    %c0_i32 = arith.constant 0 : i32
    %c0_i32_0 = arith.constant 0 : i32
    %c0_i32_1 = arith.constant 0 : i32
    return %c0_i32, %c0_i32_0 : i32, i32
  }
  func.func @transform_10(%arg0: i32) -> (i32, i32) {
    %c0_i32 = arith.constant 0 : i32
    %c0_i32_0 = arith.constant 0 : i32
    return %arg0, %c0_i32 : i32, i32
  }
}

</mosaic_0001>

<bundles_post_ra>
// kernel: tpu_custom_call.1
= control target key start
LH: loop header
LB: loop body
LE: loop exit
PB: predicated region body
PF: predicated region fallthrough
CT: control target
= control target key end

     0   :  { %15 = vsyncpa [#allocation3], 0  ;;  %s1007_s0 = inlined_call_operand.vmem [shape: bf16[16,4], index: 0, kind: input, shape index: {}]   ;;  %s1008_s1 = inlined_call_operand.vmem [shape: bf16[2,8,8], index: 1, kind: input, shape index: {}]   ;;  %s1009_s2 = inlined_call_operand.vmem [shape: bf16[4,128], index: 2, kind: input, shape index: {}]   ;;  %s1010_s3 = inlined_call_operand.vmem [shape: f32[1,128], index: 3, kind: input, shape index: {}]   ;;  %s1011_s4 = inlined_call_operand.hbm [shape: bf16[128,128], index: 4, kind: input, shape index: {}]   ;;  %s1012_s5 = inlined_call_operand.vmem [shape: f32[1,128], index: 5, kind: input, shape index: {}]   ;;  %s1013_s6 = inlined_call_operand.hbm [shape: bf16[128,128], index: 6, kind: input, shape index: {}]   ;;  %s1014_s7 = inlined_call_operand.vmem [shape: f32[1,128], index: 7, kind: input, shape index: {}]   ;;  %s1015_s8 = inlined_call_operand.hbm [shape: bf16[128,128], index: 8, kind: input, shape index: {}]   ;;  %s1016_s9 = inlined_call_operand.vmem [shape: f32[1,128], index: 9, kind: input, shape index: {}]   ;;  %s1017_s10 = inlined_call_operand.hbm [shape: f32[16,128], index: 10, kind: output, shape index: {}]  }
   0x1   :  { %16 = vsyncpa [#allocation6], 0 }
   0x2   :  { %17 = vsyncpa [#allocation4], 0  ;;  %s867_s13 = smov [#allocation5]   ;;  %s868_s15 = smov [#allocation2]  }
   0x3   :  { %s45_s14 = sshll.u32 %s867_s13, 4  ;;  %s31_s16 = sshll.u32 %s868_s15, 4  ;;  %s46_s14 = int_to_ptr.vmem [resolvable:$true] %s45_s14  ;;  %s32_s16 = int_to_ptr.vmem [resolvable:$true] %s31_s16 }
   0x4   :  { %s789_s17 = scalar_lea.vmem %s46_s14, 1024  ;;  %p794_p1 = scmp.lt.s32.totalorder %s46_s14, %s46_s14 }
   0x5   :  { %p790_p0 = scmp.ne.s32.totalorder %s46_s14, %s789_s17  ;;  %p795_p2 = scmp.lt.s32.totalorder %s789_s17, %s789_s17 }
   0x7   :  { %p796_p3 = por %p795_p2, %p794_p1 }
   0x9   :  { %p797_p4 = pnand %p796_p3, %p790_p0 }
   0xb   :  { %800 = shalt.err (!%p797_p4)
}
   0xc   :  { %s869_s18 = smov 64   ;;  %s870_s19 = smov 4  }
   0xd   :  { %51 = dma.hbm_to_vmem [thread:$0]  %s1013_s6, 1024, %s46_s14, [#allocation6], %s869_s18, %s869_s18, %s870_s19  }
   0xe   :  { %s809_s22 = scalar_lea.vmem %s32_s16, 1024  ;;  %p814_p6 = scmp.lt.s32.totalorder %s32_s16, %s32_s16 }
   0xf   :  { %p810_p5 = scmp.ne.s32.totalorder %s32_s16, %s809_s22  ;;  %p815_p7 = scmp.lt.s32.totalorder %s809_s22, %s809_s22 }
  0x11   :  { %p816_p8 = por %p815_p7, %p814_p6 }
  0x13   :  { %p817_p9 = pnand %p816_p8, %p810_p5 }
  0x15   :  { %820 = shalt.err (!%p817_p9)
}
  0x16   :  { %37 = dma.hbm_to_vmem [thread:$0]  %s1011_s4, 1024, %s32_s16, [#allocation3], %s869_s18, %s869_s18, %s870_s19  }
  0x17   :  { %s871_s25 = smov [#allocation7]  }
  0x18   :  { %s59_s26 = sshll.u32 %s871_s25, 4  ;;  %s60_s26 = int_to_ptr.vmem [resolvable:$true] %s59_s26 }
  0x19   :  { %s829_s27 = scalar_lea.vmem %s60_s26, 1024  ;;  %p834_p11 = scmp.lt.s32.totalorder %s60_s26, %s60_s26 }
  0x1a   :  { %p830_p10 = scmp.ne.s32.totalorder %s60_s26, %s829_s27  ;;  %p835_p12 = scmp.lt.s32.totalorder %s829_s27, %s829_s27 }
  0x1c   :  { %p836_p13 = por %p835_p12, %p834_p11 }
  0x1e   :  { %p837_p0 = pnand %p836_p13, %p830_p10 }
  0x20   :  { %840 = shalt.err (!%p837_p0)
}
  0x21   :  { %65 = dma.hbm_to_vmem [thread:$0]  %s1015_s8, 1024, %s60_s26, [#allocation6], %s869_s18, %s869_s18, %s870_s19  }
  0x22   :  { %861 = dma.done.wait [#allocation3], 1024  }
  0x23   :  { %862 = vsyncadd [#allocation3], 4294966272 }
  0x24   :  { %863 = dma.done.wait [#allocation6], 2048  }
  0x25   :  { %864 = vsyncadd [#allocation6], 4294965248  ;;  %v872_v0 = vmov 0.0   ;;  %vm873_vm0 = vmmov 0   ;;  %vm97_vm1 = vcmask 1041408   ;;  %v756_v3 = vld [vmem:[%s1007_s0] sm:$0xff]  }
  0x26   :  { %668 = vmatprep.subr.bf16.mxu0 %v872_v0  ;;  %670 = vmatprep.mubr.msk.bf16.mxu0 %vm873_vm0, %v872_v0  ;;  %v80_v1 = vld [vmem:[%s1009_s2] sm:$0x3]  ;;  %vm93_vm2 = vcmask 31744   ;;  %v757_v4 = vld [vmem:[#allocation2 + $0x38] sm:$0xff]   ;;  %v758_v5 = vld [vmem:[#allocation2 + $0x30] sm:$0xff]   ;;  %vm265_vm3 = vcmask 1043456  }
  0x27   :  { %674 = vmatprep.subr.bf16.mxu1 %v872_v0  ;;  %690 = vmatprep.mubr.msk.bf16.mxu1 %vm873_vm0, %v872_v0  ;;  %v99_v2 = vsel %vm97_vm1, %v80_v1, 0  ;;  %v759_v6 = vld [vmem:[#allocation2 + $0x28] sm:$0xff]   ;;  %v760_v7 = vld [vmem:[#allocation2 + $0x20] sm:$0xff]   ;;  %v761_v8 = vld [vmem:[#allocation2 + $0x18] sm:$0xff]   ;;  %vm261_vm4 = vcmask 64512   ;;  %s874_s18 = smov [#allocation8]  }
  0x28   :  { %669 = vmatpush3.bf16.msra.mxu0 %v99_v2  ;;  %675 = vmatpush3.bf16.msra.mxu1 %v757_v4  ;;  %v762_v9 = vld [vmem:[#allocation2 + $0x10] sm:$0xff]   ;;  %v763_v10 = vld [vmem:[#allocation2 + $0x8] sm:$0xff]   ;;  %v764_v11 = vld [vmem:[#allocation2] sm:$0xff]   ;;  %s590_s19 = sshll.u32 %s874_s18, 4  ;;  %s591_s19 = int_to_ptr.vmem [resolvable:$true] %s590_s19 }
  0x29   :  { %694 = vmatprep.subr.bf16.mxu0 %v872_v0  ;;  %676 = vmatprep.subr.bf16.mxu1 %v872_v0  ;;  %v603_v12 = vld [vmem:[%s1010_s3] ss:$0 sm:$0xff]  ;;  %v260_v34 = vld [vmem:[%s1008_s1 + $0x4] sm:$0xf]  ;;  %v765_v35 = vld [vmem:[#allocation5 + $0x38] sm:$0xff]   ;;  %p846_p2 = scmp.lt.s32.totalorder %s591_s19, %s591_s19 }
  0x2a   :  { %v606_v22 = vld [vmem:[%s1012_s5] ss:$0 sm:$0xff]  ;;  %v766_v36 = vld [vmem:[#allocation5 + $0x30] sm:$0xff]   ;;  %v767_v37 = vld [vmem:[#allocation5 + $0x28] sm:$0xff]  }
  0x2b   :  { %671 = vmatmul.mubr.msk.bf16.vlgmr.msra.gmra.mxu0 %vm93_vm2, %v756_v3  ;;  %v259_v31 = vld [vmem:[%s1008_s1] sm:$0xf]  ;;  %v769_v39 = vld [vmem:[#allocation5 + $0x18] sm:$0xff]   ;;  %v770_v40 = vld [vmem:[#allocation5 + $0x10] sm:$0xff]  }
  0x2c   :  { %696 = vmatprep.mubr.msk.bf16.mxu0 %vm873_vm0, %v872_v0  ;;  %677 = vmatpush3.bf16.msra.mxu1 %v758_v5  ;;  %v768_v38 = vld [vmem:[#allocation5 + $0x20] sm:$0xff]   ;;  %v771_v41 = vld [vmem:[#allocation5 + $0x8] sm:$0xff]   ;;  %v773_v43 = vld [vmem:[#allocation7 + $0x38] sm:$0xff]  }
  0x2d   :  { %678 = vmatprep.subr.bf16.mxu1 %v872_v0  ;;  %v772_v42 = vld [vmem:[#allocation5] sm:$0xff]   ;;  %v774_v44 = vld [vmem:[#allocation7 + $0x30] sm:$0xff]   ;;  %v775_v45 = vld [vmem:[#allocation7 + $0x28] sm:$0xff]  }
  0x2e   :  { %v776_v46 = vld [vmem:[#allocation7 + $0x20] sm:$0xff]   ;;  %v777_v47 = vld [vmem:[#allocation7 + $0x18] sm:$0xff]   ;;  %v778_v57 = vld [vmem:[#allocation7 + $0x10] sm:$0xff]  }
  0x2f   :  { %v779_v58 = vld [vmem:[#allocation7 + $0x8] sm:$0xff]   ;;  %v780_v59 = vld [vmem:[#allocation7] sm:$0xff]  }
  0x30   :  { %679 = vmatpush3.bf16.msra.mxu1 %v759_v6  ;;  %v617_v60 = vld [vmem:[%s1014_s7] ss:$0 sm:$0xff]  ;;  %s841_s7 = scalar_lea.vmem %s591_s19, 256 }
  0x31   :  { %680 = vmatprep.subr.bf16.mxu1 %v872_v0  ;;  %p842_p1 = scmp.ne.s32.totalorder %s591_s19, %s841_s7  ;;  %p847_p3 = scmp.lt.s32.totalorder %s841_s7, %s841_s7 }
  0x33   :  { %p848_p4 = por %p847_p3, %p846_p2 }
  0x34   :  { %681 = vmatpush3.bf16.msra.mxu1 %v760_v7 }
  0x35   :  { %682 = vmatprep.subr.bf16.mxu1 %v872_v0  ;;  %p849_p5 = pnand %p848_p4, %p842_p1 }
  0x38   :  { %683 = vmatpush3.bf16.msra.mxu1 %v761_v8 }
  0x39   :  { %684 = vmatprep.subr.bf16.mxu1 %v872_v0 }
  0x3c   :  { %685 = vmatpush3.bf16.msra.mxu1 %v762_v9 }
  0x3d   :  { %686 = vmatprep.subr.bf16.mxu1 %v872_v0 }
  0x40   :  { %687 = vmatpush3.bf16.msra.mxu1 %v763_v10 }
  0x41   :  { %688 = vmatprep.subr.bf16.mxu1 %v872_v0 }
  0x44   :  { %689 = vmatpush3.bf16.msra.mxu1 %v764_v11 }
  0x45   :  { %726 = vmatprep.subr.bf16.mxu1 %v872_v0 }
  0xeb   :  { %v135_v13 = vpop.f32.mrf.mxu0 }
  0xec   :  { %v136_v15 = vadd.f32 %v603_v12, %v135_v13 }
  0xed   :  { %v672_v14 = vpop.f32.mrf.mxu0 }
  0xee   :  { %v142_v19 = vmax.f32 %v136_v15, 0.0 }
  0xef   :  { %v138_v16 = vpop.f32.mrf.mxu0 }
  0xf0   :  { %v139_v17 = vadd.f32 %v603_v12, %v138_v16 }
  0xf1   :  { %v673_v18 = vpop.f32.mrf.mxu0 }
  0xf2   :  { %v143_v20 = vmax.f32 %v139_v17, 0.0 }
  0xf4   :  { %v144_v21 = vpack.c.bf16 %v143_v20, %v142_v19 }
  0xf6   :  { %691 = vmatmul.mubr.bf16.vlgmr.msra.gmra.mxu1 %v144_v21 }
  0xf7   :  { %742 = vmatprep.mubr.msk.bf16.mxu1 %vm873_vm0, %v872_v0  ;;  %727 = vmatpush3.bf16.msra.mxu1 %v773_v43 }
  0xf8   :  { %728 = vmatprep.subr.bf16.mxu1 %v872_v0 }
  0xfb   :  { %729 = vmatpush3.bf16.msra.mxu1 %v774_v44 }
  0xfc   :  { %730 = vmatprep.subr.bf16.mxu1 %v872_v0 }
  0xff   :  { %731 = vmatpush3.bf16.msra.mxu1 %v775_v45 }
 0x100   :  { %732 = vmatprep.subr.bf16.mxu1 %v872_v0 }
 0x103   :  { %733 = vmatpush3.bf16.msra.mxu1 %v776_v46 }
 0x104   :  { %734 = vmatprep.subr.bf16.mxu1 %v872_v0 }
 0x107   :  { %735 = vmatpush3.bf16.msra.mxu1 %v777_v47 }
 0x108   :  { %736 = vmatprep.subr.bf16.mxu1 %v872_v0 }
 0x10b   :  { %737 = vmatpush3.bf16.msra.mxu1 %v778_v57 }
 0x10c   :  { %738 = vmatprep.subr.bf16.mxu1 %v872_v0 }
 0x10f   :  { %739 = vmatpush3.bf16.msra.mxu1 %v779_v58 }
 0x110   :  { %740 = vmatprep.subr.bf16.mxu1 %v872_v0 }
 0x113   :  { %741 = vmatpush3.bf16.msra.mxu1 %v780_v59 }
 0x1b6   :  { %v250_v23 = vpop.f32.mrf.mxu1 }
 0x1b7   :  { %v251_v24 = vadd.f32 %v606_v22, %v250_v23 }
 0x1b8   :  { %v692_v25 = vpop.f32.mrf.mxu1 }
 0x1b9   :  { %v257_v26 = vpack.c.bf16 %v251_v24, %v251_v24 }
 0x1ba   :  { %v253_v27 = vpop.f32.mrf.mxu1 }
 0x1bb   :  { %v267_v28 = vsel %vm265_vm3, %v257_v26, 0  ;;  %v254_v29 = vadd.f32 %v606_v22, %v253_v27 }
 0x1bc   :  { %v693_v30 = vpop.f32.mrf.mxu1  ;;  %695 = vmatpush3.bf16.msra.mxu0 %v267_v28 }
 0x1bd   :  { %v258_v32 = vpack.c.bf16 %v254_v29, %v254_v29  ;;  %700 = vmatprep.subr.bf16.mxu0 %v872_v0 }
 0x1bf   :  { %v313_v33 = vsel %vm265_vm3, %v258_v32, 0  ;;  %697 = vmatmul.mubr.msk.bf16.vlgmr.msra.gmra.mxu0 %vm261_vm4, %v259_v31 }
 0x1c0   :  { %701 = vmatpush3.bf16.msra.mxu0 %v313_v33  ;;  %702 = vmatprep.mubr.msk.bf16.mxu0 %vm873_vm0, %v872_v0 }
 0x1c1   :  { %706 = vmatprep.subr.bf16.mxu0 %v872_v0 }
 0x1c7   :  { %703 = vmatmul.mubr.msk.bf16.vlgmr.msra.gmra.mxu0 %vm261_vm4, %v260_v34 }
 0x1c8   :  { %707 = vmatpush3.bf16.msra.mxu0 %v765_v35  ;;  %722 = vmatprep.mubr.msk.bf16.mxu0 %vm873_vm0, %v872_v0 }
 0x1c9   :  { %708 = vmatprep.subr.bf16.mxu0 %v872_v0 }
 0x1cc   :  { %709 = vmatpush3.bf16.msra.mxu0 %v766_v36 }
 0x1cd   :  { %710 = vmatprep.subr.bf16.mxu0 %v872_v0 }
 0x1d0   :  { %711 = vmatpush3.bf16.msra.mxu0 %v767_v37 }
 0x1d1   :  { %712 = vmatprep.subr.bf16.mxu0 %v872_v0 }
 0x1d4   :  { %713 = vmatpush3.bf16.msra.mxu0 %v768_v38 }
 0x1d5   :  { %714 = vmatprep.subr.bf16.mxu0 %v872_v0 }
 0x1d8   :  { %715 = vmatpush3.bf16.msra.mxu0 %v769_v39 }
 0x1d9   :  { %716 = vmatprep.subr.bf16.mxu0 %v872_v0 }
 0x1dc   :  { %717 = vmatpush3.bf16.msra.mxu0 %v770_v40 }
 0x1dd   :  { %718 = vmatprep.subr.bf16.mxu0 %v872_v0 }
 0x1e0   :  { %719 = vmatpush3.bf16.msra.mxu0 %v771_v41 }
 0x1e1   :  { %720 = vmatprep.subr.bf16.mxu0 %v872_v0  ;;  %v626_v0 = vld [vmem:[%s1016_s9] ss:$0 sm:$0xff] }
 0x1e4   :  { %721 = vmatpush3.bf16.msra.mxu0 %v772_v42 }
 0x27f   :  { %v303_v48 = vpop.f32.mrf.mxu0 }
 0x281   :  { %v698_v49 = vpop.f32.mrf.mxu0 }
 0x283   :  { %v306_v50 = vpop.f32.mrf.mxu0 }
 0x285   :  { %v699_v51 = vpop.f32.mrf.mxu0 }
 0x287   :  { %v349_v52 = vpop.f32.mrf.mxu0 }
 0x288   :  { %v355_v53 = vpack.c.bf16 %v349_v52, %v303_v48 }
 0x289   :  { %v704_v54 = vpop.f32.mrf.mxu0 }
 0x28a   :  { %723 = vmatmul.mubr.bf16.vlgmr.msra.gmra.mxu0 %v355_v53 }
 0x28b   :  { %v352_v55 = vpop.f32.mrf.mxu0 }
 0x28d   :  { %v705_v56 = vpop.f32.mrf.mxu0 }
 0x34a   :  { %v461_v61 = vpop.f32.mrf.mxu0 }
 0x34b   :  { %v462_v63 = vadd.f32 %v617_v60, %v461_v61 }
 0x34c   :  { %v724_v62 = vpop.f32.mrf.mxu0 }
 0x34d   :  { %v468_v4 = vmax.f32 %v462_v63, 0.0 }
 0x34e   :  { %v464_v1 = vpop.f32.mrf.mxu0 }
 0x34f   :  { %v465_v2 = vadd.f32 %v617_v60, %v464_v1 }
 0x350   :  { %v725_v3 = vpop.f32.mrf.mxu0 }
 0x351   :  { %v469_v5 = vmax.f32 %v465_v2, 0.0 }
 0x353   :  { %v470_v6 = vpack.c.bf16 %v469_v5, %v468_v4 }
 0x355   :  { %743 = vmatmul.mubr.bf16.vlgmr.msra.gmra.mxu1 %v470_v6 }
 0x415   :  { %v576_v7 = vpop.f32.mrf.mxu1 }
 0x416   :  { %v577_v8 = vadd.f32 %v626_v0, %v576_v7 }
 0x417   :  { %v744_v9 = vpop.f32.mrf.mxu1 }
 0x418   :  { %583 = vst [vmem:[#allocation8] sm:$0xff] %v577_v8 }
 0x419   :  { %v579_v10 = vpop.f32.mrf.mxu1 }
 0x41a   :  { %v580_v11 = vadd.f32 %v626_v0, %v579_v10 }
 0x41b   :  { %v745_v12 = vpop.f32.mrf.mxu1 }
 0x41c   :  { %584 = vst [vmem:[#allocation8 + $0x8] sm:$0xff] %v580_v11 }
 0x41d   :  { %852 = shalt.err (!%p849_p5)
}
 0x41e   :  { %s875_s20 = smov 128   ;;  %s876_s9 = smov 8  }
 0x41f   :  { %596 = dma.vmem_to_hbm [thread:$0]  %s591_s19, 256, %s1017_s10, [#allocation4], %s875_s20, %s875_s20, %s876_s9  }
 0x420   :  { %865 = dma.done.wait [#allocation4], 256  }
 0x421   :  { %866 = vsyncadd [#allocation4], 4294967040 }
 0x422   :  { %600 = vsyncpa [#allocation3], 1 }
 0x423   :  { %601 = vsyncpa [#allocation6], 1 }
 0x424   :  { %602 = vsyncpa [#allocation4], 1 }

</bundles_post_ra>
